<compile_context>
chip_gen: v7x
topology: tpu7x:2x2x1
jax: 0.10.0
libtpu: 0.0.40
codegen_flags: <defaults>
</compile_context>

<pallas_src>
import functools

import jax
import jax.numpy as jnp
from jax import lax
from jax.experimental import pallas as pl
from jax.experimental.pallas import tpu as pltpu


def critic_kernel(x_ref, w1_ref, b1_ref, w2_ref, b2_ref, w3_ref, b3_ref, o_ref):
    """One batch tile of the 3-layer MLP; batch lives on the lane axis in-kernel.

    x_ref : (TB, D) input tile in the original (B, D) layout (no wrapper transpose).
    w1_ref: (H, D)  fc1 weight, nn.Linear (out, in) convention.
    b1_ref: (H, 1)  fc1 bias column.
    w2_ref: (H, H)  fc2 weight, (out, in).
    b2_ref: (H, 1)  fc2 bias column.
    w3_ref: (H, 1)  fc3 weight column (output dim == 1).
    b3_ref: (1, 1)  fc3 bias scalar (SMEM).
    o_ref : (1, TB) output tile (lane-dense store; masked on a partial last block).
    """
    x = x_ref[...]
    # fc1 on the MXU, contracting D of both operands ('hd,bd->hb'): batch ends up on
    # lanes without an explicit transpose of the x tile.
    h1 = lax.dot_general(
        w1_ref[...], x,
        dimension_numbers=(((1,), (1,)), ((), ())),
        preferred_element_type=jnp.float32,
    )
    h1 = jnp.maximum(h1 + b1_ref[...], 0.0)                              # (H, TB)
    # TODO(synk): optionally cast h1 / w2 (and x / w1) to bf16 here (keep f32
    # accumulation) on v6e/v7x if the accuracy budget allows; breaks 1e-5 parity.
    h2 = jnp.dot(w2_ref[...], h1, preferred_element_type=jnp.float32)    # (H, TB)
    h2 = jnp.maximum(h2 + b2_ref[...], 0.0)
    # fc3 (output dim 1) off the MXU: VPU multiply + sublane reduce -> (1, TB).
    y = jnp.sum(h2 * w3_ref[...], axis=0, keepdims=True) + b3_ref[0, 0]
    o_ref[...] = y.astype(o_ref.dtype)


def _round_up(x, m):
    return ((x + m - 1) // m) * m


def _pick_tb(batch):
    """Per-generation batch tile width (pure Python, decided at trace time)."""
    kind = ""
    try:
        kind = jax.devices()[0].device_kind.lower()
    except Exception:
        pass
    # v7x has 2 TensorCores per chip -> give each TC one tile; v5e/v6e have a single
    # TC, so collapse the grid to one step (extra steps are pure overhead here).
    two_tc = ("v7" in kind) or ("tpu7" in kind)
    n_split = 2 if (two_tc and batch > 128) else 1
    return int(min(_round_up(pl.cdiv(batch, n_split), 128), 2048))


@functools.partial(jax.jit, static_argnames=("tb",))
def _critic_forward(x, w1, b1, w2, b2, w3, b3, *, tb):
    B, D = x.shape
    H = w1.shape[0]

    # Tiny reshape-only plumbing (no transposes, no padding of x).
    b1c = b1.reshape(H, 1)
    b2c = b2.reshape(H, 1)
    w3c = w3.reshape(H, 1)      # fc3 weight as an (H, 1) column
    b3s = b3.reshape(1, 1)      # fc3 bias as a single SMEM scalar

    grid = (pl.cdiv(B, tb),)

    out = pl.pallas_call(
        critic_kernel,
        out_shape=jax.ShapeDtypeStruct((1, B), jnp.float32),
        grid_spec=pl.GridSpec(
            grid=grid,
            in_specs=[
                pl.BlockSpec((tb, D), lambda i: (i, 0)),   # x tile; last block partial
                pl.BlockSpec((H, D), lambda i: (0, 0)),    # weights/biases: constant
                pl.BlockSpec((H, 1), lambda i: (0, 0)),    #   index -> VMEM-resident
                pl.BlockSpec((H, H), lambda i: (0, 0)),    #   across all batch tiles
                pl.BlockSpec((H, 1), lambda i: (0, 0)),
                pl.BlockSpec((H, 1), lambda i: (0, 0)),
                pl.BlockSpec(memory_space=pltpu.MemorySpace.SMEM),  # b3 scalar
            ],
            out_specs=pl.BlockSpec((1, tb), lambda i: (0, i)),      # lane-dense store
        ),
        compiler_params=pltpu.CompilerParams(
            # TODO(synk): if a v7x profile shows one TC idle, switch to
            # pltpu.CORE_PARALLEL / pl.core_map for an explicit 2-core split.
            dimension_semantics=("parallel",),
        ),
    )(x, w1, b1c, w2, b2c, w3c, b3s)

    # (1, B) -> (B, 1): trivial relayout matching nn.Linear's output shape.
    return out.reshape(B, 1)


def critic_forward(x, w1, b1, w2, b2, w3, b3, tb=None):
    """Fused Critic forward: relu(x@w1.T+b1) -> relu(.@w2.T+b2) -> .@w3.T + b3.

    x: (B, D); w1: (H, D); b1: (H,); w2: (H, H); b2: (H,); w3: (1, H); b3: (1,).
    Returns (B, 1) float32.
    """
    if tb is None:
        tb = _pick_tb(x.shape[0])
    return _critic_forward(x, w1, b1, w2, b2, w3, b3, tb=tb)


def init_linear(key, fan_in, fan_out):
    """Deterministic init mimicking nn.Linear (uniform in +/- 1/sqrt(fan_in))."""
    kw, kb = jax.random.split(key)
    bound = 1.0 / jnp.sqrt(float(fan_in))
    w = jax.random.uniform(kw, (fan_out, fan_in), jnp.float32, -bound, bound)
    b = jax.random.uniform(kb, (fan_out,), jnp.float32, -bound, bound)
    return w, b


def reference_forward(x, w1, b1, w2, b2, w3, b3):
    h1 = jax.nn.relu(x @ w1.T + b1)
    h2 = jax.nn.relu(h1 @ w2.T + b2)
    return h2 @ w3.T + b3


if __name__ == "__main__":
    INPUT_DIM = 10   # len(env.state) for SISO_Channel(K=10)
    HIDDEN = 64
    OUTPUT = 1
    BATCH = 500      # ragged vs the 128-aligned tile -> exercises partial-block masking

    key = jax.random.PRNGKey(0)
    kx, k1, k2, k3 = jax.random.split(key, 4)

    x = jax.random.normal(kx, (BATCH, INPUT_DIM), jnp.float32)
    w1, b1 = init_linear(k1, INPUT_DIM, HIDDEN)
    w2, b2 = init_linear(k2, HIDDEN, HIDDEN)
    w3, b3 = init_linear(k3, HIDDEN, OUTPUT)

    ref = reference_forward(x, w1, b1, w2, b2, w3, b3)

    # Default tile selection (grid = 1 step on v5e/v6e, 2 steps on v7x).
    out = jax.block_until_ready(critic_forward(x, w1, b1, w2, b2, w3, b3))
    assert out.shape == (BATCH, OUTPUT)
    assert jnp.allclose(out, ref, atol=1e-4, rtol=1e-4), "mismatch vs reference"

    # Forced multi-step grid with a partial last tile (validates the general tiling).
    out_tiled = jax.block_until_ready(critic_forward(x, w1, b1, w2, b2, w3, b3, tb=128))
    assert jnp.allclose(out_tiled, ref, atol=1e-4, rtol=1e-4), "tiled mismatch"

    print("KERNEL_OK")
</pallas_src>

<mosaic_0001>
module attributes {stable_mosaic.version = 11 : i64} {
  func.func @critic_kernel(%arg0: i32, %arg1: memref<512x10xf32, #tpu.memory_space<vmem>>, %arg2: memref<64x10xf32, #tpu.memory_space<vmem>>, %arg3: memref<64x1xf32, #tpu.memory_space<vmem>>, %arg4: memref<64x64xf32, #tpu.memory_space<vmem>>, %arg5: memref<64x1xf32, #tpu.memory_space<vmem>>, %arg6: memref<64x1xf32, #tpu.memory_space<vmem>>, %arg7: memref<1x1xf32, #tpu.memory_space<smem>>, %arg8: memref<1x512xf32, #tpu.memory_space<vmem>>) attributes {dimension_semantics = [#tpu.dimension_semantics<parallel>], iteration_bounds = array<i64: 1>, scalar_prefetch = 0 : i64, scratch_operands = 0 : i64, tpu.core_type = #tpu.core_type<tc>, window_params = [{transform_indices = @transform_0, window_bounds = array<i64: 512, 10>}, {pipeline_mode = #tpu.pipeline_mode<synchronous>, transform_indices = @transform_1, window_bounds = array<i64: 64, 10>}, {pipeline_mode = #tpu.pipeline_mode<synchronous>, transform_indices = @transform_2, window_bounds = array<i64: 64, 1>}, {pipeline_mode = #tpu.pipeline_mode<synchronous>, transform_indices = @transform_3, window_bounds = array<i64: 64, 64>}, {pipeline_mode = #tpu.pipeline_mode<synchronous>, transform_indices = @transform_4, window_bounds = array<i64: 64, 1>}, {pipeline_mode = #tpu.pipeline_mode<synchronous>, transform_indices = @transform_5, window_bounds = array<i64: 64, 1>}, {transform_indices = @transform_6, window_bounds = array<i64: 1, 1>}, {transform_indices = @transform_7, window_bounds = array<i64: 1, 512>}]} {
    %c0 = arith.constant 0 : index
    %c0_0 = arith.constant 0 : index
    %0 = vector.load %arg1[%c0, %c0_0] : memref<512x10xf32, #tpu.memory_space<vmem>>, vector<512x10xf32>
    %c0_1 = arith.constant 0 : index
    %c0_2 = arith.constant 0 : index
    %1 = vector.load %arg2[%c0_1, %c0_2] : memref<64x10xf32, #tpu.memory_space<vmem>>, vector<64x10xf32>
    %cst = arith.constant dense<0.000000e+00> : vector<64x512xf32>
    %2 = tpu.matmul %1, %0, %cst {dimension_numbers = #tpu.dot_dimension_numbers<[1], [1], [0], [0], [0, 0, 1, 0], [], []>} : vector<64x10xf32>, vector<512x10xf32>, vector<64x512xf32> -> vector<64x512xf32>
    %c0_3 = arith.constant 0 : index
    %c0_4 = arith.constant 0 : index
    %3 = vector.load %arg3[%c0_3, %c0_4] : memref<64x1xf32, #tpu.memory_space<vmem>>, vector<64x1xf32>
    %4 = vector.broadcast %3 : vector<64x1xf32> to vector<64x512xf32>
    %5 = arith.addf %2, %4 : vector<64x512xf32>
    %cst_5 = arith.constant 0.000000e+00 : f32
    %6 = vector.broadcast %cst_5 : f32 to vector<64x512xf32>
    %7 = arith.maximumf %5, %6 : vector<64x512xf32>
    %c0_6 = arith.constant 0 : index
    %c0_7 = arith.constant 0 : index
    %8 = vector.load %arg4[%c0_6, %c0_7] : memref<64x64xf32, #tpu.memory_space<vmem>>, vector<64x64xf32>
    %cst_8 = arith.constant dense<0.000000e+00> : vector<64x512xf32>
    %9 = tpu.matmul %8, %7, %cst_8 {dimension_numbers = #tpu.dot_dimension_numbers<[1], [0], [0], [1], [0, 0, 1, 1], [], []>} : vector<64x64xf32>, vector<64x512xf32>, vector<64x512xf32> -> vector<64x512xf32>
    %c0_9 = arith.constant 0 : index
    %c0_10 = arith.constant 0 : index
    %10 = vector.load %arg5[%c0_9, %c0_10] : memref<64x1xf32, #tpu.memory_space<vmem>>, vector<64x1xf32>
    %11 = vector.broadcast %10 : vector<64x1xf32> to vector<64x512xf32>
    %12 = arith.addf %9, %11 : vector<64x512xf32>
    %cst_11 = arith.constant 0.000000e+00 : f32
    %13 = vector.broadcast %cst_11 : f32 to vector<64x512xf32>
    %14 = arith.maximumf %12, %13 : vector<64x512xf32>
    %c0_12 = arith.constant 0 : index
    %c0_13 = arith.constant 0 : index
    %15 = vector.load %arg6[%c0_12, %c0_13] : memref<64x1xf32, #tpu.memory_space<vmem>>, vector<64x1xf32>
    %16 = vector.broadcast %15 : vector<64x1xf32> to vector<64x512xf32>
    %17 = arith.mulf %14, %16 : vector<64x512xf32>
    %cst_14 = arith.constant dense<0.000000e+00> : vector<512xf32>
    %18 = vector.multi_reduction <add>, %17, %cst_14 [0] : vector<64x512xf32> to vector<512xf32>
    %19 = vector.shape_cast %18 : vector<512xf32> to vector<1x512xf32>
    %c0_15 = arith.constant 0 : index
    %c0_16 = arith.constant 0 : index
    %20 = memref.load %arg7[%c0_15, %c0_16] : memref<1x1xf32, #tpu.memory_space<smem>>
    %21 = vector.broadcast %20 : f32 to vector<1x512xf32>
    %22 = arith.addf %19, %21 : vector<1x512xf32>
    %c0_17 = arith.constant 0 : index
    %c0_18 = arith.constant 0 : index
    %23 = vector.load %arg8[%c0_17, %c0_18] : memref<1x512xf32, #tpu.memory_space<vmem>>, vector<1x512xf32>
    tpu.vector_store %arg8[%c0_17, %c0_18], %22 {strides = array<i32>} : memref<1x512xf32, #tpu.memory_space<vmem>>, vector<1x512xf32>,
    return
  }
  func.func @transform_0(%arg0: i32) -> (i32, i32) {
    %c0_i32 = arith.constant 0 : i32
    %c0_i32_0 = arith.constant 0 : i32
    return %arg0, %c0_i32 : i32, i32
  }
  func.func @transform_1(%arg0: i32) -> (i32, i32) {
    %c0_i32 = arith.constant 0 : i32
    %c0_i32_0 = arith.constant 0 : i32
    %c0_i32_1 = arith.constant 0 : i32
    return %c0_i32, %c0_i32_0 : i32, i32
  }
  func.func @transform_2(%arg0: i32) -> (i32, i32) {
    %c0_i32 = arith.constant 0 : i32
    %c0_i32_0 = arith.constant 0 : i32
    %c0_i32_1 = arith.constant 0 : i32
    return %c0_i32, %c0_i32_0 : i32, i32
  }
  func.func @transform_3(%arg0: i32) -> (i32, i32) {
    %c0_i32 = arith.constant 0 : i32
    %c0_i32_0 = arith.constant 0 : i32
    %c0_i32_1 = arith.constant 0 : i32
    return %c0_i32, %c0_i32_0 : i32, i32
  }
  func.func @transform_4(%arg0: i32) -> (i32, i32) {
    %c0_i32 = arith.constant 0 : i32
    %c0_i32_0 = arith.constant 0 : i32
    %c0_i32_1 = arith.constant 0 : i32
    return %c0_i32, %c0_i32_0 : i32, i32
  }
  func.func @transform_5(%arg0: i32) -> (i32, i32) {
    %c0_i32 = arith.constant 0 : i32
    %c0_i32_0 = arith.constant 0 : i32
    %c0_i32_1 = arith.constant 0 : i32
    return %c0_i32, %c0_i32_0 : i32, i32
  }
  func.func @transform_6(%arg0: i32) -> (i32, i32) {
    %c0_i32 = arith.constant 0 : i32
    %c0_i32_0 = arith.constant 0 : i32
    %c0_i32_1 = arith.constant 0 : i32
    return %c0_i32, %c0_i32_0 : i32, i32
  }
  func.func @transform_7(%arg0: i32) -> (i32, i32) {
    %c0_i32 = arith.constant 0 : i32
    %c0_i32_0 = arith.constant 0 : i32
    return %c0_i32, %arg0 : i32, i32
  }
}

</mosaic_0001>

<bundles_post_ra>
// kernel: _critic_forward.1
= control target key start
LH: loop header
LB: loop body
LE: loop exit
PB: predicated region body
PF: predicated region fallthrough
CT: control target
= control target key end

     0   :  { %vm148_vm0 = vcmask 80896   ;;  %v1498_v7 = vmov 0   ;;  %s2033_s0 = inlined_call_operand.vmem [shape: f32[500,10], index: 0, kind: input, shape index: {}]   ;;  %s2034_s1 = inlined_call_operand.vmem [shape: f32[64,10], index: 1, kind: input, shape index: {}]   ;;  %s2035_s2 = inlined_call_operand.vmem [shape: f32[64,1], index: 2, kind: input, shape index: {}]   ;;  %s2036_s3 = inlined_call_operand.vmem [shape: f32[64,64], index: 3, kind: input, shape index: {}]   ;;  %s2037_s4 = inlined_call_operand.vmem [shape: f32[64,1], index: 4, kind: input, shape index: {}]   ;;  %s2038_s5 = inlined_call_operand.vmem [shape: f32[64,1], index: 5, kind: input, shape index: {}]   ;;  %s2039_s6 = inlined_call_operand.<no memory space> [shape: f32[1,1], index: 6, kind: input, shape index: {}]   ;;  %s2040_s7 = inlined_call_operand.hbm [shape: f32[1,500], index: 7, kind: output, shape index: {}]  }
   0x1   :  { %v44_v0 = vld [vmem:[%s2033_s0 + $0x80] sm:$0xff]  ;;  %v45_v1 = vld [vmem:[%s2033_s0 + $0x88] sm:$0xff]  ;;  %vm1553_vm1 = vmpackc.low %vm148_vm0, %vm148_vm0  ;;  %1472 = vset.pattern.permute.xlu0 %v1498_v7  ;;  %1473 = vset.pattern.permute.xlu1 %v1498_v7 }
   0x2   :  { %v76_v2 = vld [vmem:[%s2033_s0 + $0x180] sm:$0xff]  ;;  %v1340_v3 = vpack.c.bf16 %v45_v1, %v44_v0  ;;  %v77_v5 = vld [vmem:[%s2033_s0 + $0x188] sm:$0xff]  ;;  %v46_v14 = vld [vmem:[%s2033_s0 + $0x90] sm:$0xff] }
   0x3   :  { %v28_v6 = vld [vmem:[%s2033_s0] sm:$0xff]  ;;  %v1388_v8 = vpack.c.bf16 %v77_v5, %v76_v2  ;;  %v29_v9 = vld [vmem:[%s2033_s0 + $0x8] sm:$0xff]  ;;  %v47_v15 = vld [vmem:[%s2033_s0 + $0x98] sm:$0xff] }
   0x4   :  { %v60_v10 = vld [vmem:[%s2033_s0 + $0x100] sm:$0xff]  ;;  %v61_v11 = vld [vmem:[%s2033_s0 + $0x108] sm:$0xff]  ;;  %1342 = vmatprep.subr.msk.bf16.mxu0 %vm1553_vm1, %v1340_v3  ;;  %v1343_v12 = vpack.c.bf16 %v29_v9, %v28_v6  ;;  %v78_v16 = vld [vmem:[%s2033_s0 + $0x190] sm:$0xff]  ;;  %v1346_v17 = vpack.c.bf16 %v47_v15, %v46_v14 }
   0x5   :  { %v1391_v13 = vpack.c.bf16 %v61_v11, %v60_v10  ;;  %1390 = vmatprep.subr.msk.bf16.mxu1 %vm1553_vm1, %v1388_v8  ;;  %v79_v18 = vld [vmem:[%s2033_s0 + $0x198] sm:$0xff]  ;;  %v30_v20 = vld [vmem:[%s2033_s0 + $0x10] sm:$0xff]  ;;  %v48_v24 = vld [vmem:[%s2033_s0 + $0xa0] sm:$0xff] }
   0x6   :  { %1345 = vmatpush3.bf16.xpose.msk.msra.mxu0 %vm1553_vm1, %v1343_v12  ;;  %v1394_v19 = vpack.c.bf16 %v79_v18, %v78_v16  ;;  %v31_v21 = vld [vmem:[%s2033_s0 + $0x18] sm:$0xff]  ;;  %v62_v22 = vld [vmem:[%s2033_s0 + $0x110] sm:$0xff]  ;;  %v49_v25 = vld [vmem:[%s2033_s0 + $0xa8] sm:$0xff] }
   0x7   :  { %1393 = vmatpush3.bf16.xpose.msk.msra.mxu1 %vm1553_vm1, %v1391_v13  ;;  %1348 = vmatprep.subr.msk.bf16.mxu0 %vm1553_vm1, %v1346_v17  ;;  %v63_v23 = vld [vmem:[%s2033_s0 + $0x118] sm:$0xff]  ;;  %v80_v26 = vld [vmem:[%s2033_s0 + $0x1a0] sm:$0xff]  ;;  %v81_v27 = vld [vmem:[%s2033_s0 + $0x1a8] sm:$0xff]  ;;  %v1349_v28 = vpack.c.bf16 %v31_v21, %v30_v20  ;;  %v1352_v30 = vpack.c.bf16 %v49_v25, %v48_v24 }
   0x8   :  { %1396 = vmatprep.subr.msk.bf16.mxu1 %vm1553_vm1, %v1394_v19  ;;  %v1397_v29 = vpack.c.bf16 %v63_v23, %v62_v22  ;;  %v1400_v31 = vpack.c.bf16 %v81_v27, %v80_v26  ;;  %v32_v32 = vld [vmem:[%s2033_s0 + $0x20] sm:$0xff]  ;;  %v33_v33 = vld [vmem:[%s2033_s0 + $0x28] sm:$0xff]  ;;  %v50_v36 = vld [vmem:[%s2033_s0 + $0xb0] sm:$0xff] }
   0x9   :  { %v64_v34 = vld [vmem:[%s2033_s0 + $0x120] sm:$0xff]  ;;  %v65_v35 = vld [vmem:[%s2033_s0 + $0x128] sm:$0xff]  ;;  %v51_v37 = vld [vmem:[%s2033_s0 + $0xb8] sm:$0xff]  ;;  %v1355_v40 = vpack.c.bf16 %v33_v33, %v32_v32 }
   0xa   :  { %v82_v38 = vld [vmem:[%s2033_s0 + $0x1b0] sm:$0xff]  ;;  %v83_v39 = vld [vmem:[%s2033_s0 + $0x1b8] sm:$0xff]  ;;  %v1403_v41 = vpack.c.bf16 %v65_v35, %v64_v34  ;;  %v1358_v42 = vpack.c.bf16 %v51_v37, %v50_v36  ;;  %v1665_v46 = vld [vmem:[%s2034_s1] sm:$0xff] }
   0xb   :  { %v1406_v43 = vpack.c.bf16 %v83_v39, %v82_v38  ;;  %v34_v44 = vld [vmem:[%s2033_s0 + $0x30] sm:$0xff]  ;;  %v35_v45 = vld [vmem:[%s2033_s0 + $0x38] sm:$0xff]  ;;  %v52_v49 = vld [vmem:[%s2033_s0 + $0xc0] sm:$0xff]  ;;  %1276 = vmatprep.mubr.msk.f32.mxu0 %vm148_vm0, %v1665_v46  ;;  %1324 = vmatprep.mubr.msk.f32.mxu1 %vm148_vm0, %v1665_v46 }
   0xc   :  { %v66_v47 = vld [vmem:[%s2033_s0 + $0x130] sm:$0xff]  ;;  %v67_v48 = vld [vmem:[%s2033_s0 + $0x138] sm:$0xff]  ;;  %v53_v50 = vld [vmem:[%s2033_s0 + $0xc8] sm:$0xff]  ;;  %v1361_v54 = vpack.c.bf16 %v35_v45, %v34_v44 }
   0xd   :  { %v84_v51 = vld [vmem:[%s2033_s0 + $0x1c0] sm:$0xff]  ;;  %v85_v52 = vld [vmem:[%s2033_s0 + $0x1c8] sm:$0xff]  ;;  %v1409_v55 = vpack.c.bf16 %v67_v48, %v66_v47  ;;  %v102_v56 = vld [vmem:[%s2035_s2 + $0x10] sm:$0xff]  ;;  %v1364_v57 = vpack.c.bf16 %v53_v50, %v52_v49 }
   0xe   :  { %1351 = vmatpush3.bf16.xpose.msk.msra.mxu0 %vm1553_vm1, %v1349_v28  ;;  %v100_v53 = vld [vmem:[%s2035_s2] sm:$0xff]  ;;  %v1412_v58 = vpack.c.bf16 %v85_v52, %v84_v51  ;;  %120 = vperm.xlu1 %1473, %v102_v56   ;;  %v101_v59 = vld [vmem:[%s2035_s2 + $0x8] sm:$0xff]  ;;  %v103_v60 = vld [vmem:[%s2035_s2 + $0x18] sm:$0xff] }
   0xf   :  { %1399 = vmatpush3.bf16.xpose.msk.msra.mxu1 %vm1553_vm1, %v1397_v29  ;;  %1354 = vmatprep.subr.msk.bf16.mxu0 %vm1553_vm1, %v1352_v30  ;;  %v36_v61 = vld [vmem:[%s2033_s0 + $0x40] sm:$0xff]  ;;  %v37_v62 = vld [vmem:[%s2033_s0 + $0x48] sm:$0xff]  ;;  %v54_v1 = vld [vmem:[%s2033_s0 + $0xd0] sm:$0xff] }
  0x10   :  { %1402 = vmatprep.subr.msk.bf16.mxu1 %vm1553_vm1, %v1400_v31  ;;  %110 = vperm.xlu0 %1472, %v100_v53   ;;  %v68_v63 = vld [vmem:[%s2033_s0 + $0x140] sm:$0xff]  ;;  %v69_v0 = vld [vmem:[%s2033_s0 + $0x148] sm:$0xff]  ;;  %v55_v2 = vld [vmem:[%s2033_s0 + $0xd8] sm:$0xff] }
  0x11   :  { %v86_v3 = vld [vmem:[%s2033_s0 + $0x1d0] sm:$0xff]  ;;  %v87_v5 = vld [vmem:[%s2033_s0 + $0x1d8] sm:$0xff]  ;;  %v104_v6 = vld [vmem:[%s2035_s2 + $0x20] sm:$0xff] }
  0x12   :  { %125 = vperm.xlu1 %1473, %v103_v60   ;;  %v105_v7 = vld [vmem:[%s2035_s2 + $0x28] sm:$0xff] }
  0x14   :  { %115 = vperm.xlu0 %1472, %v101_v59  }
  0x16   :  { %1357 = vmatpush3.bf16.xpose.msk.msra.mxu0 %vm1553_vm1, %v1355_v40 }
  0x17   :  { %1405 = vmatpush3.bf16.xpose.msk.msra.mxu1 %vm1553_vm1, %v1403_v41  ;;  %1360 = vmatprep.subr.msk.bf16.mxu0 %vm1553_vm1, %v1358_v42 }
  0x18   :  { %1408 = vmatprep.subr.msk.bf16.mxu1 %vm1553_vm1, %v1406_v43 }
  0x1e   :  { %1363 = vmatpush3.bf16.xpose.msk.msra.mxu0 %vm1553_vm1, %v1361_v54 }
  0x1f   :  { %1411 = vmatpush3.bf16.xpose.msk.msra.mxu1 %vm1553_vm1, %v1409_v55  ;;  %1366 = vmatprep.subr.msk.bf16.mxu0 %vm1553_vm1, %v1364_v57 }
  0x20   :  { %1414 = vmatprep.subr.msk.bf16.mxu1 %vm1553_vm1, %v1412_v58 }
  0x21   :  { %13 = vsyncpa [#allocation4], 0  ;;  %v1367_v8 = vpack.c.bf16 %v37_v62, %v36_v61  ;;  %v1415_v9 = vpack.c.bf16 %v69_v0, %v68_v63  ;;  %v1370_v10 = vpack.c.bf16 %v55_v2, %v54_v1  ;;  %v1418_v11 = vpack.c.bf16 %v87_v5, %v86_v3  ;;  %130 = vperm.xlu0 %1472, %v104_v6   ;;  %v106_v12 = vld [vmem:[%s2035_s2 + $0x30] sm:$0xff]  ;;  %v107_v13 = vld [vmem:[%s2035_s2 + $0x38] sm:$0xff]  ;;  %s1501_s16 = smov [#allocation3]  }
  0x22   :  { %135 = vperm.xlu1 %1473, %v105_v7   ;;  %v38_v14 = vld [vmem:[%s2033_s0 + $0x50] sm:$0xff]  ;;  %v39_v15 = vld [vmem:[%s2033_s0 + $0x58] sm:$0xff]  ;;  %v56_v18 = vld [vmem:[%s2033_s0 + $0xe0] sm:$0xff]  ;;  %v1499_v2 = vmov 0.0   ;;  %vm679_vm2 = vcmask 523264   ;;  %s1140_s17 = sshll.u32 %s1501_s16, 4  ;;  %s1141_s17 = int_to_ptr.vmem [resolvable:$true] %s1140_s17 }
  0x23   :  { %v70_v16 = vld [vmem:[%s2033_s0 + $0x150] sm:$0xff]  ;;  %v71_v17 = vld [vmem:[%s2033_s0 + $0x158] sm:$0xff]  ;;  %v57_v19 = vld [vmem:[%s2033_s0 + $0xe8] sm:$0xff]  ;;  %v1373_v24 = vpack.c.bf16 %v39_v15, %v38_v14  ;;  %p1479_p1 = scmp.lt.s32.totalorder %s1141_s17, %s1141_s17 }
  0x24   :  { %v88_v20 = vld [vmem:[%s2033_s0 + $0x1e0] sm:$0xff]  ;;  %v89_v21 = vld [vmem:[%s2033_s0 + $0x1e8] sm:$0xff]  ;;  %v1421_v25 = vpack.c.bf16 %v71_v17, %v70_v16  ;;  %v1376_v26 = vpack.c.bf16 %v57_v19, %v56_v18  ;;  %v633_v28 = vld [vmem:[%s2037_s4 + $0x10] sm:$0xff] }
  0x25   :  { %140 = vperm.xlu0 %1472, %v106_v12   ;;  %v631_v22 = vld [vmem:[%s2037_s4] sm:$0xff]  ;;  %v632_v23 = vld [vmem:[%s2037_s4 + $0x8] sm:$0xff]  ;;  %v1424_v27 = vpack.c.bf16 %v89_v21, %v88_v20  ;;  %v634_v29 = vld [vmem:[%s2037_s4 + $0x18] sm:$0xff] }
  0x26   :  { %1369 = vmatpush3.bf16.xpose.msk.msra.mxu0 %vm1553_vm1, %v1367_v8  ;;  %145 = vperm.xlu1 %1473, %v107_v13   ;;  %v40_v30 = vld [vmem:[%s2033_s0 + $0x60] sm:$0xff]  ;;  %v41_v31 = vld [vmem:[%s2033_s0 + $0x68] sm:$0xff]  ;;  %v58_v34 = vld [vmem:[%s2033_s0 + $0xf0] sm:$0xff] }
  0x27   :  { %1417 = vmatpush3.bf16.xpose.msk.msra.mxu1 %vm1553_vm1, %v1415_v9  ;;  %1372 = vmatprep.subr.msk.bf16.mxu0 %vm1553_vm1, %v1370_v10  ;;  %v72_v32 = vld [vmem:[%s2033_s0 + $0x160] sm:$0xff]  ;;  %v73_v33 = vld [vmem:[%s2033_s0 + $0x168] sm:$0xff]  ;;  %v59_v35 = vld [vmem:[%s2033_s0 + $0xf8] sm:$0xff]  ;;  %v1379_v40 = vpack.c.bf16 %v41_v31, %v40_v30 }
  0x28   :  { %1420 = vmatprep.subr.msk.bf16.mxu1 %vm1553_vm1, %v1418_v11  ;;  %v90_v36 = vld [vmem:[%s2033_s0 + $0x1f0] sm:$0xff]  ;;  %v91_v37 = vld [vmem:[%s2033_s0 + $0x1f8] sm:$0xff]  ;;  %v962_v38 = vld [vmem:[%s2038_s5] sm:$0xff]  ;;  %v1427_v41 = vpack.c.bf16 %v73_v33, %v72_v32  ;;  %v1382_v42 = vpack.c.bf16 %v59_v35, %v58_v34 }
  0x29   :  { %641 = vperm.xlu0 %1472, %v631_v22   ;;  %v963_v39 = vld [vmem:[%s2038_s5 + $0x8] sm:$0xff]  ;;  %v1430_v43 = vpack.c.bf16 %v91_v37, %v90_v36  ;;  %v635_v44 = vld [vmem:[%s2037_s4 + $0x20] sm:$0xff]  ;;  %v964_v45 = vld [vmem:[%s2038_s5 + $0x10] sm:$0xff] }
  0x2a   :  { %646 = vperm.xlu1 %1473, %v632_v23   ;;  %v42_v47 = vld [vmem:[%s2033_s0 + $0x70] sm:$0xff]  ;;  %v43_v48 = vld [vmem:[%s2033_s0 + $0x78] sm:$0xff]  ;;  %v636_v51 = vld [vmem:[%s2037_s4 + $0x28] sm:$0xff] }
  0x2b   :  { %v74_v49 = vld [vmem:[%s2033_s0 + $0x170] sm:$0xff]  ;;  %v75_v50 = vld [vmem:[%s2033_s0 + $0x178] sm:$0xff]  ;;  %v1385_v53 = vpack.c.bf16 %v43_v48, %v42_v47  ;;  %v966_v56 = vld [vmem:[%s2038_s5 + $0x20] sm:$0xff] }
  0x2c   :  { %v965_v52 = vld [vmem:[%s2038_s5 + $0x18] sm:$0xff]  ;;  %v1433_v54 = vpack.c.bf16 %v75_v50, %v74_v49  ;;  %v637_v55 = vld [vmem:[%s2037_s4 + $0x30] sm:$0xff]  ;;  %v967_v58 = vld [vmem:[%s2038_s5 + $0x28] sm:$0xff] }
  0x2d   :  { %651 = vperm.xlu0 %1472, %v633_v28   ;;  %v638_v57 = vld [vmem:[%s2037_s4 + $0x38] sm:$0xff]  ;;  %v93_v59 = vld [vmem:[%s2034_s1 + $0x8] sm:$0xff]  ;;  %v968_v4 = vld [vmem:[%s2038_s5 + $0x30] sm:$0xff] }
  0x2e   :  { %1375 = vmatpush3.bf16.xpose.msk.msra.mxu0 %vm1553_vm1, %v1373_v24  ;;  %656 = vperm.xlu1 %1473, %v634_v29   ;;  %v969_v60 = vld [vmem:[%s2038_s5 + $0x38] sm:$0xff]  ;;  %v94_v61 = vld [vmem:[%s2034_s1 + $0x10] sm:$0xff]  ;;  %v96_v62 = vld [vmem:[%s2034_s1 + $0x20] sm:$0xff] }
  0x2f   :  { %1423 = vmatpush3.bf16.xpose.msk.msra.mxu1 %vm1553_vm1, %v1421_v25  ;;  %1378 = vmatprep.subr.msk.bf16.mxu0 %vm1553_vm1, %v1376_v26  ;;  %v97_v63 = vld [vmem:[%s2034_s1 + $0x28] sm:$0xff]  ;;  %v98_v0 = vld [vmem:[%s2034_s1 + $0x30] sm:$0xff]  ;;  %v99_v1 = vld [vmem:[%s2034_s1 + $0x38] sm:$0xff] }
  0x30   :  { %1426 = vmatprep.subr.msk.bf16.mxu1 %vm1553_vm1, %v1424_v27 }
  0x31   :  { %972 = vperm.xlu0 %1472, %v962_v38  }
  0x32   :  { %977 = vperm.xlu1 %1473, %v963_v39  }
  0x35   :  { %661 = vperm.xlu0 %1472, %v635_v44  }
  0x36   :  { %1381 = vmatpush3.bf16.xpose.msk.msra.mxu0 %vm1553_vm1, %v1379_v40  ;;  %982 = vperm.xlu1 %1473, %v964_v45  }
  0x37   :  { %1429 = vmatpush3.bf16.xpose.msk.msra.mxu1 %vm1553_vm1, %v1427_v41  ;;  %1384 = vmatprep.subr.msk.bf16.mxu0 %vm1553_vm1, %v1382_v42 }
  0x38   :  { %1432 = vmatprep.subr.msk.bf16.mxu1 %vm1553_vm1, %v1430_v43 }
  0x39   :  { %666 = vperm.xlu0 %1472, %v636_v51  }
  0x3a   :  { %987 = vperm.xlu1 %1473, %v965_v52  }
  0x3d   :  { %671 = vperm.xlu0 %1472, %v637_v55  }
  0x3e   :  { %1387 = vmatpush3.bf16.xpose.msk.msra.mxu0 %vm1553_vm1, %v1385_v53  ;;  %992 = vperm.xlu1 %1473, %v966_v56  }
  0x3f   :  { %1435 = vmatpush3.bf16.xpose.msk.msra.mxu1 %vm1553_vm1, %v1433_v54 }
  0x41   :  { %676 = vperm.xlu0 %1472, %v638_v57  }
  0x42   :  { %997 = vperm.xlu1 %1473, %v967_v58  }
  0x45   :  { %1277 = vmatmul.mubr.msk.f32.vlgmr.msra.gmra.mrb[0].mxu0 %vm148_vm0, %v1665_v46  ;;  %1002 = vperm.xlu0 %1472, %v968_v4  }
  0x46   :  { %1325 = vmatmul.mubr.msk.f32.vlgmr.msra.gmra.mrb[0].mxu1 %vm148_vm0, %v1665_v46  ;;  %1278 = vmatprep.mubr.msk.f32.mxu0 %vm148_vm0, %v93_v59  ;;  %v95_v46 = vld [vmem:[%s2034_s1 + $0x18] sm:$0xff] }
  0x47   :  { %1326 = vmatprep.mubr.msk.f32.mxu1 %vm148_vm0, %v93_v59  ;;  %1007 = vperm.xlu1 %1473, %v969_v60  }
  0x49   :  { %1279 = vmatmul.mubr.msk.f32.gmra.mrb[2].mxu0 %vm148_vm0, %v93_v59 }
  0x4a   :  { %1327 = vmatmul.mubr.msk.f32.gmra.mrb[2].mxu1 %vm148_vm0, %v93_v59  ;;  %1280 = vmatprep.mubr.msk.f32.mxu0 %vm148_vm0, %v94_v61 }
  0x4b   :  { %1328 = vmatprep.mubr.msk.f32.mxu1 %vm148_vm0, %v94_v61 }
  0x4d   :  { %1281 = vmatmul.mubr.msk.f32.gmra.mrb[4].mxu0 %vm148_vm0, %v94_v61 }
  0x4e   :  { %1329 = vmatmul.mubr.msk.f32.gmra.mrb[4].mxu1 %vm148_vm0, %v94_v61  ;;  %1282 = vmatprep.mubr.msk.f32.mxu0 %vm148_vm0, %v95_v46 }
  0x4f   :  { %1330 = vmatprep.mubr.msk.f32.mxu1 %vm148_vm0, %v95_v46 }
  0x51   :  { %1283 = vmatmul.mubr.msk.f32.gmra.mrb[6].mxu0 %vm148_vm0, %v95_v46 }
  0x52   :  { %1331 = vmatmul.mubr.msk.f32.gmra.mrb[6].mxu1 %vm148_vm0, %v95_v46  ;;  %1284 = vmatprep.mubr.msk.f32.mxu0 %vm148_vm0, %v96_v62 }
  0x53   :  { %1332 = vmatprep.mubr.msk.f32.mxu1 %vm148_vm0, %v96_v62 }
  0x55   :  { %1285 = vmatmul.mubr.msk.f32.gmra.mrb[8].mxu0 %vm148_vm0, %v96_v62 }
  0x56   :  { %1333 = vmatmul.mubr.msk.f32.gmra.mrb[8].mxu1 %vm148_vm0, %v96_v62  ;;  %1286 = vmatprep.mubr.msk.f32.mxu0 %vm148_vm0, %v97_v63 }
  0x57   :  { %1334 = vmatprep.mubr.msk.f32.mxu1 %vm148_vm0, %v97_v63 }
  0x59   :  { %1287 = vmatmul.mubr.msk.f32.gmra.mrb[10].mxu0 %vm148_vm0, %v97_v63 }
  0x5a   :  { %1335 = vmatmul.mubr.msk.f32.gmra.mrb[10].mxu1 %vm148_vm0, %v97_v63  ;;  %1288 = vmatprep.mubr.msk.f32.mxu0 %vm148_vm0, %v98_v0 }
  0x5b   :  { %1336 = vmatprep.mubr.msk.f32.mxu1 %vm148_vm0, %v98_v0 }
  0x5d   :  { %1289 = vmatmul.mubr.msk.f32.gmra.mrb[12].mxu0 %vm148_vm0, %v98_v0 }
  0x5e   :  { %1337 = vmatmul.mubr.msk.f32.gmra.mrb[12].mxu1 %vm148_vm0, %v98_v0  ;;  %1290 = vmatprep.mubr.msk.f32.mxu0 %vm148_vm0, %v99_v1 }
  0x5f   :  { %1338 = vmatprep.mubr.msk.f32.mxu1 %vm148_vm0, %v99_v1 }
  0x61   :  { %1291 = vmatmul.mubr.msk.f32.gmra.mrb[14].mxu0 %vm148_vm0, %v99_v1 }
  0x62   :  { %1339 = vmatmul.mubr.msk.f32.gmra.mrb[14].mxu1 %vm148_vm0, %v99_v1  ;;  %768 = vmatprep.mubr.f32.mxu0 %v1499_v2 }
  0x63   :  { %881 = vmatprep.mubr.f32.mxu1 %v1499_v2 }
  0x8d   :  { %v121_v10 = vpop.permute.xlu1 %120 }
  0x8f   :  { %v111_v3 = vpop.permute.xlu0 %110 }
  0x91   :  { %v126_v39 = vpop.permute.xlu1 %125 }
  0x93   :  { %v116_v9 = vpop.permute.xlu0 %115 }
  0xa0   :  { %v131_v1 = vpop.permute.xlu0 %130 }
 0x118   :  { %v431_v5 = vpop.f32.mrb[0].mxu0 }
 0x119   :  { %v544_v6 = vpop.f32.mrb[0].mxu1  ;;  %v433_v7 = vpop.f32.mrb[1].mxu0  ;;  %v432_v11 = vadd.f32 %v431_v5, %v111_v3 }
 0x11a   :  { %v546_v8 = vpop.f32.mrb[1].mxu1  ;;  %v545_v12 = vadd.f32 %v544_v6, %v111_v3  ;;  %v434_v13 = vadd.f32 %v433_v7, %v111_v3  ;;  %v136_v6 = vpop.permute.xlu1 %135 }
 0x11b   :  { %v547_v14 = vadd.f32 %v546_v8, %v111_v3  ;;  %v591_v23 = vmax.f32 %v432_v11, 0.0 }
 0x11c   :  { %v437_v15 = vpop.f32.mrb[2].mxu0  ;;  %v593_v24 = vmax.f32 %v545_v12, 0.0  ;;  %v592_v27 = vmax.f32 %v434_v13, 0.0 }
 0x11d   :  { %v550_v16 = vpop.f32.mrb[2].mxu1  ;;  %v438_v17 = vadd.f32 %v437_v15, %v116_v9  ;;  %v439_v19 = vpop.f32.mrb[3].mxu0  ;;  %v594_v28 = vmax.f32 %v547_v14, 0.0 }
 0x11e   :  { %v551_v18 = vadd.f32 %v550_v16, %v116_v9  ;;  %v552_v20 = vpop.f32.mrb[3].mxu1  ;;  %v440_v21 = vadd.f32 %v439_v19, %v116_v9 }
 0x11f   :  { %v553_v22 = vadd.f32 %v552_v20, %v116_v9  ;;  %v595_v25 = vmax.f32 %v438_v17, 0.0 }
 0x120   :  { %v597_v26 = vmax.f32 %v551_v18, 0.0  ;;  %v596_v29 = vmax.f32 %v440_v21, 0.0  ;;  %v443_v31 = vpop.f32.mrb[4].mxu0 }
 0x121   :  { %v598_v30 = vmax.f32 %v553_v22, 0.0  ;;  %v556_v32 = vpop.f32.mrb[4].mxu1  ;;  %v1438_v33 = vpack.c.bf16 %v595_v25, %v591_v23  ;;  %v445_v35 = vpop.f32.mrb[5].mxu0  ;;  %v444_v40 = vadd.f32 %v443_v31, %v121_v10 }
 0x122   :  { %v1454_v34 = vpack.c.bf16 %v597_v26, %v593_v24  ;;  %v558_v36 = vpop.f32.mrb[5].mxu1  ;;  %v1436_v37 = vpack.c.bf16 %v596_v29, %v592_v27  ;;  %v557_v41 = vadd.f32 %v556_v32, %v121_v10  ;;  %v446_v42 = vadd.f32 %v445_v35, %v121_v10 }
 0x123   :  { %v1452_v38 = vpack.c.bf16 %v598_v30, %v594_v28  ;;  %v559_v43 = vadd.f32 %v558_v36, %v121_v10  ;;  %v599_v53 = vmax.f32 %v444_v40, 0.0  ;;  %v146_v36 = vpop.permute.xlu1 %145 }
 0x124   :  { %v449_v44 = vpop.f32.mrb[6].mxu0  ;;  %1437 = vmatprep.subr.bf16.mxu0 %v1436_v37  ;;  %v601_v54 = vmax.f32 %v557_v41, 0.0  ;;  %v600_v57 = vmax.f32 %v446_v42, 0.0 }
 0x125   :  { %v562_v45 = vpop.f32.mrb[6].mxu1  ;;  %1453 = vmatprep.subr.bf16.mxu1 %v1452_v38  ;;  %v450_v47 = vadd.f32 %v449_v44, %v126_v39  ;;  %v451_v49 = vpop.f32.mrb[7].mxu0  ;;  %1439 = vmatpush1.bf16.msra.mxu0 %v1438_v33  ;;  %v602_v58 = vmax.f32 %v559_v43, 0.0 }
 0x126   :  { %v563_v48 = vadd.f32 %v562_v45, %v126_v39  ;;  %v564_v50 = vpop.f32.mrb[7].mxu1  ;;  %1455 = vmatpush1.bf16.msra.mxu1 %v1454_v34  ;;  %v452_v51 = vadd.f32 %v451_v49, %v126_v39  ;;  %v141_v33 = vpop.permute.xlu0 %140 }
 0x127   :  { %v565_v52 = vadd.f32 %v564_v50, %v126_v39  ;;  %v603_v55 = vmax.f32 %v450_v47, 0.0 }
 0x128   :  { %v605_v56 = vmax.f32 %v563_v48, 0.0  ;;  %v604_v59 = vmax.f32 %v452_v51, 0.0  ;;  %v455_v60 = vpop.f32.mrb[8].mxu0 }
 0x129   :  { %v606_v4 = vmax.f32 %v565_v52, 0.0  ;;  %v568_v61 = vpop.f32.mrb[8].mxu1  ;;  %v1442_v46 = vpack.c.bf16 %v603_v55, %v599_v53  ;;  %v457_v63 = vpop.f32.mrb[9].mxu0  ;;  %v456_v7 = vadd.f32 %v455_v60, %v131_v1 }
 0x12a   :  { %v1458_v62 = vpack.c.bf16 %v605_v56, %v601_v54  ;;  %v570_v0 = vpop.f32.mrb[9].mxu1  ;;  %v1440_v3 = vpack.c.bf16 %v604_v59, %v600_v57  ;;  %v569_v8 = vadd.f32 %v568_v61, %v131_v1  ;;  %v458_v9 = vadd.f32 %v457_v63, %v131_v1  ;;  %v623_v61 = vld [vmem:[%s2036_s3] sm:$0xff]  ;;  %v626_v63 = vld [vmem:[%s2036_s3 + $0x18] sm:$0xff] }
 0x12b   :  { %v1456_v5 = vpack.c.bf16 %v606_v4, %v602_v58  ;;  %v571_v10 = vadd.f32 %v570_v0, %v131_v1  ;;  %v607_v19 = vmax.f32 %v456_v7, 0.0  ;;  %v627_v0 = vld [vmem:[%s2036_s3 + $0x20] sm:$0xff]  ;;  %v628_v1 = vld [vmem:[%s2036_s3 + $0x28] sm:$0xff]  ;;  %v647_v7 = vpop.permute.xlu1 %646 }
 0x12c   :  { %v461_v11 = vpop.f32.mrb[10].mxu0  ;;  %1441 = vmatprep.subr.bf16.mxu0 %v1440_v3  ;;  %v609_v20 = vmax.f32 %v569_v8, 0.0  ;;  %v608_v23 = vmax.f32 %v458_v9, 0.0  ;;  %v629_v3 = vld [vmem:[%s2036_s3 + $0x30] sm:$0xff] }
 0x12d   :  { %v574_v12 = vpop.f32.mrb[10].mxu1  ;;  %1457 = vmatprep.subr.bf16.mxu1 %v1456_v5  ;;  %v462_v13 = vadd.f32 %v461_v11, %v136_v6  ;;  %v463_v15 = vpop.f32.mrb[11].mxu0  ;;  %1443 = vmatpush1.bf16.msra.mxu0 %v1442_v46  ;;  %v610_v24 = vmax.f32 %v571_v10, 0.0  ;;  %v624_v46 = vld [vmem:[%s2036_s3 + $0x8] sm:$0xff]  ;;  %v630_v5 = vld [vmem:[%s2036_s3 + $0x38] sm:$0xff] }
 0x12e   :  { %v575_v14 = vadd.f32 %v574_v12, %v136_v6  ;;  %v576_v16 = vpop.f32.mrb[11].mxu1  ;;  %1459 = vmatpush1.bf16.msra.mxu1 %v1458_v62  ;;  %v464_v17 = vadd.f32 %v463_v15, %v136_v6  ;;  %v625_v62 = vld [vmem:[%s2036_s3 + $0x10] sm:$0xff] }
 0x12f   :  { %v577_v18 = vadd.f32 %v576_v16, %v136_v6  ;;  %v611_v21 = vmax.f32 %v462_v13, 0.0  ;;  %v642_v6 = vpop.permute.xlu0 %641  ;;  %v1994_v9 = vpop.permute.xlu1 %656 }
 0x130   :  { %v613_v22 = vmax.f32 %v575_v14, 0.0  ;;  %v612_v25 = vmax.f32 %v464_v17, 0.0  ;;  %v467_v27 = vpop.f32.mrb[12].mxu0 }
 0x131   :  { %v614_v26 = vmax.f32 %v577_v18, 0.0  ;;  %v580_v28 = vpop.f32.mrb[12].mxu1  ;;  %v1446_v29 = vpack.c.bf16 %v611_v21, %v607_v19  ;;  %v469_v31 = vpop.f32.mrb[13].mxu0  ;;  %v468_v37 = vadd.f32 %v467_v27, %v141_v33 }
 0x132   :  { %v1462_v30 = vpack.c.bf16 %v613_v22, %v609_v20  ;;  %v582_v32 = vpop.f32.mrb[13].mxu1  ;;  %v1444_v34 = vpack.c.bf16 %v612_v25, %v608_v23  ;;  %v581_v38 = vadd.f32 %v580_v28, %v141_v33  ;;  %v470_v39 = vadd.f32 %v469_v31, %v141_v33 }
 0x133   :  { %v1460_v35 = vpack.c.bf16 %v614_v26, %v610_v24  ;;  %v583_v40 = vadd.f32 %v582_v32, %v141_v33  ;;  %v615_v50 = vmax.f32 %v468_v37, 0.0  ;;  %v652_v8 = vpop.permute.xlu0 %651  ;;  %v978_v11 = vpop.permute.xlu1 %977 }
 0x134   :  { %v473_v41 = vpop.f32.mrb[14].mxu0  ;;  %1445 = vmatprep.subr.bf16.mxu0 %v1444_v34  ;;  %v617_v51 = vmax.f32 %v581_v38, 0.0  ;;  %v616_v54 = vmax.f32 %v470_v39, 0.0 }
 0x135   :  { %v586_v42 = vpop.f32.mrb[14].mxu1  ;;  %1461 = vmatprep.subr.bf16.mxu1 %v1460_v35  ;;  %v474_v43 = vadd.f32 %v473_v41, %v146_v36  ;;  %v475_v45 = vpop.f32.mrb[15].mxu0  ;;  %1447 = vmatpush1.bf16.msra.mxu0 %v1446_v29  ;;  %v618_v55 = vmax.f32 %v583_v40, 0.0 }
 0x136   :  { %v587_v44 = vadd.f32 %v586_v42, %v146_v36  ;;  %v588_v47 = vpop.f32.mrb[15].mxu1  ;;  %1463 = vmatpush1.bf16.msra.mxu1 %v1462_v30  ;;  %v476_v48 = vadd.f32 %v475_v45, %v146_v36 }
 0x137   :  { %v589_v49 = vadd.f32 %v588_v47, %v146_v36  ;;  %v619_v52 = vmax.f32 %v474_v43, 0.0  ;;  %v973_v10 = vpop.permute.xlu0 %972  ;;  %v983_v13 = vpop.permute.xlu1 %982 }
 0x138   :  { %v621_v53 = vmax.f32 %v587_v44, 0.0  ;;  %v620_v56 = vmax.f32 %v476_v48, 0.0 }
 0x139   :  { %v622_v57 = vmax.f32 %v589_v49, 0.0  ;;  %v1450_v58 = vpack.c.bf16 %v619_v52, %v615_v50 }
 0x13a   :  { %v1466_v59 = vpack.c.bf16 %v621_v53, %v617_v51  ;;  %v1448_v4 = vpack.c.bf16 %v620_v56, %v616_v54 }
 0x13b   :  { %v1464_v60 = vpack.c.bf16 %v622_v57, %v618_v55  ;;  %v1996_v12 = vpop.permute.xlu0 %661  ;;  %v988_v34 = vpop.permute.xlu1 %987 }
 0x13c   :  { %1449 = vmatprep.subr.bf16.mxu0 %v1448_v4 }
 0x13d   :  { %1465 = vmatprep.subr.bf16.mxu1 %v1464_v60  ;;  %1451 = vmatpush1.bf16.msra.mxu0 %v1450_v58 }
 0x13e   :  { %1467 = vmatpush1.bf16.msra.mxu1 %v1466_v59 }
 0x13f   :  { %v1998_v21 = vpop.permute.xlu0 %666 }
 0x140   :  { %1228 = vmatmul.mubr.msk.f32.vlgmr.msra.gmra.mrb[16].mxu0 %vm679_vm2, %v623_v61 }
 0x141   :  { %1236 = vmatmul.mubr.msk.f32.vlgmr.msra.gmra.mrb[16].mxu1 %vm679_vm2, %v623_v61  ;;  %774 = vmatprep.mubr.f32.mxu0 %v1499_v2 }
 0x142   :  { %887 = vmatprep.mubr.f32.mxu1 %v1499_v2 }
 0x143   :  { %v2000_v56 = vpop.permute.xlu0 %671 }
 0x144   :  { %1229 = vmatmul.mubr.msk.f32.gmra.mrb[18].mxu0 %vm679_vm2, %v624_v46 }
 0x145   :  { %1237 = vmatmul.mubr.msk.f32.gmra.mrb[18].mxu1 %vm679_vm2, %v624_v46  ;;  %780 = vmatprep.mubr.f32.mxu0 %v1499_v2 }
 0x146   :  { %893 = vmatprep.mubr.f32.mxu1 %v1499_v2 }
 0x148   :  { %1230 = vmatmul.mubr.msk.f32.gmra.mrb[20].mxu0 %vm679_vm2, %v625_v62 }
 0x149   :  { %1238 = vmatmul.mubr.msk.f32.gmra.mrb[20].mxu1 %vm679_vm2, %v625_v62  ;;  %786 = vmatprep.mubr.f32.mxu0 %v1499_v2 }
 0x14a   :  { %899 = vmatprep.mubr.f32.mxu1 %v1499_v2 }
 0x14c   :  { %1231 = vmatmul.mubr.msk.f32.gmra.mrb[22].mxu0 %vm679_vm2, %v626_v63 }
 0x14d   :  { %1239 = vmatmul.mubr.msk.f32.gmra.mrb[22].mxu1 %vm679_vm2, %v626_v63  ;;  %792 = vmatprep.mubr.f32.mxu0 %v1499_v2 }
 0x14e   :  { %905 = vmatprep.mubr.f32.mxu1 %v1499_v2 }
 0x150   :  { %1232 = vmatmul.mubr.msk.f32.gmra.mrb[24].mxu0 %vm679_vm2, %v627_v0 }
 0x151   :  { %1240 = vmatmul.mubr.msk.f32.gmra.mrb[24].mxu1 %vm679_vm2, %v627_v0  ;;  %798 = vmatprep.mubr.f32.mxu0 %v1499_v2 }
 0x152   :  { %911 = vmatprep.mubr.f32.mxu1 %v1499_v2 }
 0x154   :  { %1233 = vmatmul.mubr.msk.f32.gmra.mrb[26].mxu0 %vm679_vm2, %v628_v1 }
 0x155   :  { %1241 = vmatmul.mubr.msk.f32.gmra.mrb[26].mxu1 %vm679_vm2, %v628_v1  ;;  %804 = vmatprep.mubr.f32.mxu0 %v1499_v2 }
 0x156   :  { %917 = vmatprep.mubr.f32.mxu1 %v1499_v2 }
 0x158   :  { %1234 = vmatmul.mubr.msk.f32.gmra.mrb[28].mxu0 %vm679_vm2, %v629_v3 }
 0x159   :  { %1242 = vmatmul.mubr.msk.f32.gmra.mrb[28].mxu1 %vm679_vm2, %v629_v3  ;;  %810 = vmatprep.mubr.f32.mxu0 %v1499_v2 }
 0x15a   :  { %923 = vmatprep.mubr.f32.mxu1 %v1499_v2 }
 0x15c   :  { %1235 = vmatmul.mubr.msk.f32.gmra.mrb[30].mxu0 %vm679_vm2, %v630_v5 }
 0x15d   :  { %1243 = vmatmul.mubr.msk.f32.gmra.mrb[30].mxu1 %vm679_vm2, %v630_v5 }
 0x213   :  { %v770_v14 = vpop.f32.mrb[16].mxu0 }
 0x214   :  { %v883_v2 = vpop.f32.mrb[16].mxu1  ;;  %v771_v15 = vadd.f32 %v770_v14, %v642_v6  ;;  %v772_v17 = vpop.f32.mrb[17].mxu0 }
 0x215   :  { %v884_v16 = vadd.f32 %v883_v2, %v642_v6  ;;  %v885_v18 = vpop.f32.mrb[17].mxu1  ;;  %v773_v19 = vadd.f32 %v772_v17, %v642_v6 }
 0x216   :  { %v886_v20 = vadd.f32 %v885_v18, %v642_v6  ;;  %v930_v22 = vmax.f32 %v771_v15, 0.0  ;;  %v993_v15 = vpop.permute.xlu1 %992 }
 0x217   :  { %v932_v23 = vmax.f32 %v884_v16, 0.0  ;;  %v931_v24 = vmax.f32 %v773_v19, 0.0  ;;  %v776_v26 = vpop.f32.mrb[18].mxu0 }
 0x218   :  { %v933_v25 = vmax.f32 %v886_v20, 0.0  ;;  %v889_v27 = vpop.f32.mrb[18].mxu1  ;;  %v777_v28 = vadd.f32 %v776_v26, %v647_v7  ;;  %v778_v30 = vpop.f32.mrb[19].mxu0  ;;  %v1010_v35 = vmul.f32 %v973_v10, %v930_v22 }
 0x219   :  { %v890_v29 = vadd.f32 %v889_v27, %v647_v7  ;;  %v891_v31 = vpop.f32.mrb[19].mxu1  ;;  %v779_v32 = vadd.f32 %v778_v30, %v647_v7  ;;  %v1012_v36 = vmul.f32 %v973_v10, %v932_v23  ;;  %v1011_v39 = vmul.f32 %v973_v10, %v931_v24 }
 0x21a   :  { %v892_v33 = vadd.f32 %v891_v31, %v647_v7  ;;  %v934_v37 = vmax.f32 %v777_v28, 0.0  ;;  %v1013_v40 = vmul.f32 %v973_v10, %v933_v25 }
 0x21b   :  { %v936_v38 = vmax.f32 %v890_v29, 0.0  ;;  %v935_v41 = vmax.f32 %v779_v32, 0.0  ;;  %v782_v43 = vpop.f32.mrb[20].mxu0 }
 0x21c   :  { %v937_v42 = vmax.f32 %v892_v33, 0.0  ;;  %v895_v44 = vpop.f32.mrb[20].mxu1  ;;  %v1014_v45 = vmul.f32 %v978_v11, %v934_v37  ;;  %v783_v48 = vadd.f32 %v782_v43, %v652_v8  ;;  %v784_v50 = vpop.f32.mrb[21].mxu0 }
 0x21d   :  { %v1016_v47 = vmul.f32 %v978_v11, %v936_v38  ;;  %v896_v49 = vadd.f32 %v895_v44, %v652_v8  ;;  %v897_v51 = vpop.f32.mrb[21].mxu1  ;;  %v1015_v52 = vmul.f32 %v978_v11, %v935_v41  ;;  %v785_v54 = vadd.f32 %v784_v50, %v652_v8 }
 0x21e   :  { %v1017_v53 = vmul.f32 %v978_v11, %v937_v42  ;;  %v898_v55 = vadd.f32 %v897_v51, %v652_v8  ;;  %v1042_v57 = vadd.f32 %v1014_v45, %v1010_v35  ;;  %v938_v59 = vmax.f32 %v783_v48, 0.0 }
 0x21f   :  { %v1068_v58 = vadd.f32 %v1016_v47, %v1012_v36  ;;  %v940_v4 = vmax.f32 %v896_v49, 0.0  ;;  %v1055_v60 = vadd.f32 %v1015_v52, %v1011_v39  ;;  %v939_v46 = vmax.f32 %v785_v54, 0.0  ;;  %v788_v63 = vpop.f32.mrb[22].mxu0  ;;  %v677_v36 = vpop.permute.xlu0 %676 }
 0x220   :  { %v1081_v61 = vadd.f32 %v1017_v53, %v1013_v40  ;;  %v941_v62 = vmax.f32 %v898_v55, 0.0  ;;  %v901_v0 = vpop.f32.mrb[22].mxu1  ;;  %v1018_v1 = vmul.f32 %v983_v13, %v938_v59  ;;  %v789_v5 = vadd.f32 %v788_v63, %v1994_v9  ;;  %v790_v7 = vpop.f32.mrb[23].mxu0 }
 0x221   :  { %v1020_v3 = vmul.f32 %v983_v13, %v940_v4  ;;  %v902_v6 = vadd.f32 %v901_v0, %v1994_v9  ;;  %v903_v8 = vpop.f32.mrb[23].mxu1  ;;  %v1019_v10 = vmul.f32 %v983_v13, %v939_v46  ;;  %v791_v14 = vadd.f32 %v790_v7, %v1994_v9 }
 0x222   :  { %v1021_v11 = vmul.f32 %v983_v13, %v941_v62  ;;  %v904_v2 = vadd.f32 %v903_v8, %v1994_v9  ;;  %v1043_v16 = vadd.f32 %v1042_v57, %v1018_v1  ;;  %v942_v18 = vmax.f32 %v789_v5, 0.0  ;;  %v998_v57 = vpop.permute.xlu1 %997 }
 0x223   :  { %v1069_v17 = vadd.f32 %v1068_v58, %v1020_v3  ;;  %v944_v19 = vmax.f32 %v902_v6, 0.0  ;;  %v1056_v20 = vadd.f32 %v1055_v60, %v1019_v10  ;;  %v943_v23 = vmax.f32 %v791_v14, 0.0  ;;  %v794_v25 = vpop.f32.mrb[24].mxu0 }
 0x224   :  { %v1082_v22 = vadd.f32 %v1081_v61, %v1021_v11  ;;  %v945_v24 = vmax.f32 %v904_v2, 0.0  ;;  %v907_v26 = vpop.f32.mrb[24].mxu1  ;;  %v1022_v27 = vmul.f32 %v988_v34, %v942_v18  ;;  %v795_v29 = vadd.f32 %v794_v25, %v1996_v12  ;;  %v796_v30 = vpop.f32.mrb[25].mxu0 }
 0x225   :  { %v1024_v28 = vmul.f32 %v988_v34, %v944_v19  ;;  %v908_v13 = vadd.f32 %v907_v26, %v1996_v12  ;;  %v909_v31 = vpop.f32.mrb[25].mxu1  ;;  %v1023_v9 = vmul.f32 %v988_v34, %v943_v23  ;;  %v797_v33 = vadd.f32 %v796_v30, %v1996_v12 }
 0x226   :  { %v1025_v32 = vmul.f32 %v988_v34, %v945_v24  ;;  %v910_v35 = vadd.f32 %v909_v31, %v1996_v12  ;;  %v1044_v37 = vadd.f32 %v1043_v16, %v1022_v27  ;;  %v946_v39 = vmax.f32 %v795_v29, 0.0 }
 0x227   :  { %v1070_v38 = vadd.f32 %v1069_v17, %v1024_v28  ;;  %v948_v40 = vmax.f32 %v908_v13, 0.0  ;;  %v1057_v41 = vadd.f32 %v1056_v20, %v1023_v9  ;;  %v947_v43 = vmax.f32 %v797_v33, 0.0  ;;  %v800_v45 = vpop.f32.mrb[26].mxu0 }
 0x228   :  { %v1083_v42 = vadd.f32 %v1082_v22, %v1025_v32  ;;  %v949_v44 = vmax.f32 %v910_v35, 0.0  ;;  %v913_v47 = vpop.f32.mrb[26].mxu1  ;;  %v1026_v48 = vmul.f32 %v993_v15, %v946_v39  ;;  %v801_v50 = vadd.f32 %v800_v45, %v1998_v21  ;;  %v802_v51 = vpop.f32.mrb[27].mxu0 }
 0x229   :  { %v1028_v49 = vmul.f32 %v993_v15, %v948_v40  ;;  %v914_v34 = vadd.f32 %v913_v47, %v1998_v21  ;;  %v915_v52 = vpop.f32.mrb[27].mxu1  ;;  %v1027_v12 = vmul.f32 %v993_v15, %v947_v43  ;;  %v803_v54 = vadd.f32 %v802_v51, %v1998_v21  ;;  %v1008_v40 = vpop.permute.xlu1 %1007 }
 0x22a   :  { %v1029_v53 = vmul.f32 %v993_v15, %v949_v44  ;;  %v916_v55 = vadd.f32 %v915_v52, %v1998_v21  ;;  %v1045_v58 = vadd.f32 %v1044_v37, %v1026_v48  ;;  %v950_v4 = vmax.f32 %v801_v50, 0.0  ;;  %v1003_v15 = vpop.permute.xlu0 %1002 }
 0x22b   :  { %v1071_v59 = vadd.f32 %v1070_v38, %v1028_v49  ;;  %v952_v60 = vmax.f32 %v914_v34, 0.0  ;;  %v1058_v61 = vadd.f32 %v1057_v41, %v1027_v12  ;;  %v951_v62 = vmax.f32 %v803_v54, 0.0  ;;  %v806_v0 = vpop.f32.mrb[28].mxu0 }
 0x22c   :  { %v1084_v46 = vadd.f32 %v1083_v42, %v1029_v53  ;;  %v953_v63 = vmax.f32 %v916_v55, 0.0  ;;  %v919_v1 = vpop.f32.mrb[28].mxu1  ;;  %v1030_v3 = vmul.f32 %v998_v57, %v950_v4  ;;  %v807_v6 = vadd.f32 %v806_v0, %v2000_v56  ;;  %v808_v8 = vpop.f32.mrb[29].mxu0 }
 0x22d   :  { %v1032_v5 = vmul.f32 %v998_v57, %v952_v60  ;;  %v920_v7 = vadd.f32 %v919_v1, %v2000_v56  ;;  %v921_v10 = vpop.f32.mrb[29].mxu1  ;;  %v1031_v21 = vmul.f32 %v998_v57, %v951_v62  ;;  %v809_v14 = vadd.f32 %v808_v8, %v2000_v56 }
 0x22e   :  { %v1033_v11 = vmul.f32 %v998_v57, %v953_v63  ;;  %v922_v2 = vadd.f32 %v921_v10, %v2000_v56  ;;  %v1046_v16 = vadd.f32 %v1045_v58, %v1030_v3  ;;  %v954_v18 = vmax.f32 %v807_v6, 0.0 }
 0x22f   :  { %v1072_v17 = vadd.f32 %v1071_v59, %v1032_v5  ;;  %v956_v19 = vmax.f32 %v920_v7, 0.0  ;;  %v1059_v20 = vadd.f32 %v1058_v61, %v1031_v21  ;;  %v955_v23 = vmax.f32 %v809_v14, 0.0  ;;  %v812_v25 = vpop.f32.mrb[30].mxu0 }
 0x230   :  { %v1085_v22 = vadd.f32 %v1084_v46, %v1033_v11  ;;  %v957_v24 = vmax.f32 %v922_v2, 0.0  ;;  %v925_v26 = vpop.f32.mrb[30].mxu1  ;;  %v1034_v27 = vmul.f32 %v1003_v15, %v954_v18  ;;  %v813_v29 = vadd.f32 %v812_v25, %v677_v36  ;;  %v814_v30 = vpop.f32.mrb[31].mxu0 }
 0x231   :  { %v1036_v28 = vmul.f32 %v1003_v15, %v956_v19  ;;  %v926_v13 = vadd.f32 %v925_v26, %v677_v36  ;;  %v927_v31 = vpop.f32.mrb[31].mxu1  ;;  %v1035_v9 = vmul.f32 %v1003_v15, %v955_v23  ;;  %v815_v56 = vadd.f32 %v814_v30, %v677_v36 }
 0x232   :  { %v1037_v32 = vmul.f32 %v1003_v15, %v957_v24  ;;  %v928_v33 = vadd.f32 %v927_v31, %v677_v36  ;;  %v1047_v35 = vadd.f32 %v1046_v16, %v1034_v27  ;;  %v958_v38 = vmax.f32 %v813_v29, 0.0 }
 0x233   :  { %v1073_v37 = vadd.f32 %v1072_v17, %v1036_v28  ;;  %v960_v39 = vmax.f32 %v926_v13, 0.0  ;;  %v1060_v41 = vadd.f32 %v1059_v20, %v1035_v9  ;;  %v959_v43 = vmax.f32 %v815_v56, 0.0 }
 0x234   :  { %v1086_v42 = vadd.f32 %v1085_v22, %v1037_v32  ;;  %v961_v44 = vmax.f32 %v928_v33, 0.0  ;;  %v1038_v45 = vmul.f32 %v1008_v40, %v958_v38  ;;  %v1500_v62 = vmov 1966171168  }
 0x235   :  { %v1040_v47 = vmul.f32 %v1008_v40, %v960_v39  ;;  %v1039_v48 = vmul.f32 %v1008_v40, %v959_v43  ;;  %v1107_v63 = vunpack.c.l.s4 %v1500_v62  ;;  %v1109_v0 = vlaneseq }
 0x236   :  { %v1041_v49 = vmul.f32 %v1008_v40, %v961_v44  ;;  %v1048_v50 = vadd.f32 %v1047_v35, %v1038_v45  ;;  %v1095_v10 = vstv %s2039_s6  ;;  %s1474_s6 = scalar_lea.vmem %s1141_s17, 64 }
 0x237   :  { %v1074_v34 = vadd.f32 %v1073_v37, %v1040_v47  ;;  %v1061_v51 = vadd.f32 %v1060_v41, %v1039_v48  ;;  %v1108_v14 = vunpack.c.0.s8 %v1107_v63  ;;  %v1110_v2 = vshrl.u32 %v1109_v0, 7  ;;  %p1475_p0 = scmp.ne.s32.totalorder %s1141_s17, %s1474_s6  ;;  %p1480_p2 = scmp.lt.s32.totalorder %s1474_s6, %s1474_s6 }
 0x238   :  { %v1087_v52 = vadd.f32 %v1086_v42, %v1041_v49  ;;  %v1049_v12 = vrot.slane %v1048_v50, 4  ;;  %vm1131_vm3 = vcmp.lt.s32.totalorder %v1109_v0, 512 }
 0x239   :  { %v1075_v53 = vrot.slane %v1074_v34, 4  ;;  %v1062_v36 = vrot.slane %v1061_v51, 4  ;;  %v1111_v24 = vsub.s32 %v1108_v14, %v1110_v2  ;;  %p1481_p3 = por %p1480_p2, %p1479_p1 }
 0x23a   :  { %v1088_v54 = vrot.slane %v1087_v52, 4  ;;  %v1050_v55 = vadd.f32 %v1049_v12, %v1048_v50 }
 0x23b   :  { %v1076_v57 = vadd.f32 %v1075_v53, %v1074_v34  ;;  %v1063_v58 = vadd.f32 %v1062_v36, %v1061_v51  ;;  %p1482_p4 = pnand %p1481_p3, %p1475_p0 }
 0x23c   :  { %v1089_v59 = vadd.f32 %v1088_v54, %v1087_v52  ;;  %v1051_v4 = vrot.slane %v1050_v55, 2 }
 0x23d   :  { %v1077_v60 = vrot.slane %v1076_v57, 2  ;;  %v1064_v61 = vrot.slane %v1063_v58, 2 }
 0x23e   :  { %v1090_v46 = vrot.slane %v1089_v59, 2  ;;  %v1052_v1 = vadd.f32 %v1051_v4, %v1050_v55 }
 0x23f   :  { %v1078_v3 = vadd.f32 %v1077_v60, %v1076_v57  ;;  %v1065_v5 = vadd.f32 %v1064_v61, %v1063_v58 }
 0x240   :  { %v1091_v6 = vadd.f32 %v1090_v46, %v1089_v59  ;;  %v1053_v7 = vrot.slane %v1052_v1, 1 }
 0x241   :  { %v1079_v8 = vrot.slane %v1078_v3, 1  ;;  %v1066_v21 = vrot.slane %v1065_v5, 1 }
 0x242   :  { %v1092_v11 = vrot.slane %v1091_v6, 1  ;;  %v1054_v15 = vadd.f32 %v1053_v7, %v1052_v1 }
 0x243   :  { %v1080_v16 = vadd.f32 %v1079_v8, %v1078_v3  ;;  %v1067_v17 = vadd.f32 %v1066_v21, %v1065_v5 }
 0x244   :  { %v1093_v18 = vadd.f32 %v1092_v11, %v1091_v6  ;;  %v1096_v19 = vadd.f32 %v1095_v10, %v1054_v15 }
 0x245   :  { %v1098_v20 = vadd.f32 %v1095_v10, %v1080_v16  ;;  %v1097_v22 = vadd.f32 %v1095_v10, %v1067_v17 }
 0x246   :  { %v1099_v23 = vadd.f32 %v1095_v10, %v1093_v18 }
 0x247   :  { %v1104_v25 = vcombine.low %v1096_v19, %v1097_v22 }
 0x248   :  { %v1105_v26 = vcombine.low %v1098_v20, %v1099_v23 }
 0x249   :  { %v1112_v27 = vrot.slane %v1104_v25, %v1111_v24 }
 0x24a   :  { %v1119_v28 = vrot.slane %v1105_v26, %v1111_v24 }
 0x24c   :  { %v1120_v29 = vcombine.low %v1112_v27, %v1119_v28 }
 0x24e   :  { %v1127_v13 = vrot.slane %v1120_v29, %v1111_v24 }
 0x250   :  { %1133 = vst.msk [vmem:[#allocation3] sm:$0xf] %vm1131_vm3, %v1127_v13 }
 0x251   :  { %1485 = shalt.err (!%p1482_p4)
}
 0x252   :  { %s1486_s2 = scalar_lea.hbm %s2040_s7, 64 }
 0x253   :  { %p1487_p5 = scmp.ne.s32.totalorder %s2040_s7, %s1486_s2  ;;  %p1490_p6 = scmp.lt.u32.totalorder %s1486_s2, %s2040_s7 }
 0x255   :  { %p1492_p7 = pnand %p1490_p6, %p1487_p5 }
 0x257   :  { %1495 = shalt.err (!%p1492_p7)
}
 0x258   :  { %1143 = dma.vmem_to_hbm [thread:$0]  %s1141_s17, 64, %s2040_s7, [#allocation4]  }
 0x259   :  { %1496 = dma.done.wait [#allocation4], 64  }
 0x25a   :  { %1497 = vsyncadd [#allocation4], 4294967232 }
 0x25b   :  { %1147 = vsyncpa [#allocation4], 1 }

</bundles_post_ra>
